<compile_context>
chip_gen: v5e
topology: v5e:2x2
jax: 0.10.0
libtpu: 0.0.40
codegen_flags: <defaults>
</compile_context>

<pallas_src>
import jax
import jax.numpy as jnp
from jax.experimental import pallas as pl
from jax.experimental.pallas import tpu as pltpu


def target_net_forward(x_nchw, paras, *, tb=None, compute_dtype=jnp.bfloat16,
                       max_weight_block_bytes=8 * 1024 * 1024):
    """Apply the HyperNet-generated per-sample TargetFC chain.

    x_nchw: (B, C0, H, W) activations (target_in_vec reshaped to NCHW).
    paras[f'target_fc{i}w']: (B, Cout_i, Cin_i, 1, 1)
    paras[f'target_fc{i}b']: (B, Cout_i)
    Returns sigmoid(squeeze(fc5(...fc1(x)...))), matching the PyTorch target
    network applied to the HyperNet-generated parameters.
    """
    B, C0, H, W = x_nchw.shape
    S = H * W

    # channel chain [C0, f1, f2, f3, f4, 1]
    chans = [C0] + [int(paras[f"target_fc{i}w"].shape[1]) for i in range(1, 6)]

    # ---- TB (samples per grid block) -------------------------------------
    itemsize = jnp.dtype(compute_dtype).itemsize
    sum_cc = sum(chans[i] * chans[i + 1] for i in range(5))
    if tb is None:
        # One big block unless the TB^2-sized block-diagonal weights would blow
        # the per-block VMEM budget.  We do NOT force grid >= 2: on v5e/v6e
        # (single TensorCore) extra grid steps only add ~0.35us/step overhead.
        # TODO(synk): on v7x (2 TCs) cap tb at cdiv(B, 2) so the "parallel"
        # batch axis can shard across both cores.
        tb = B
        while tb > 1 and tb * tb * sum_cc * itemsize > max_weight_block_bytes:
            tb = pl.cdiv(tb, 2)
    tb = int(max(1, min(tb, B)))
    b_pad = pl.cdiv(B, tb) * tb
    grid = b_pad // tb
    pad_b = b_pad - B

    # ---- activations: (grid, S, TB*C0) — batch stacked along the lane axis
    x = x_nchw.reshape(B, C0, S)
    if pad_b:
        x = jnp.pad(x, ((0, pad_b), (0, 0), (0, 0)))
    x_blk = (x.reshape(grid, tb, C0, S)
              .transpose(0, 3, 1, 2)
              .reshape(grid, S, tb * C0)
              .astype(compute_dtype))

    # ---- per-layer params: block-diagonal W^T with the bias as a final row
    # wb_i[g] = [ blockdiag(W_b^T for b in block g) ;  bias row ]
    #         : (TB*Cin_i + 1, TB*Cout_i)
    eye = jnp.eye(tb, dtype=jnp.float32)
    wb_arrays = []
    for i in range(1, 6):
        cin, cout = chans[i - 1], chans[i]
        w = paras[f"target_fc{i}w"].reshape(-1, cout, cin).astype(jnp.float32)
        bias = paras[f"target_fc{i}b"].reshape(-1, cout).astype(jnp.float32)
        if pad_b:
            w = jnp.pad(w, ((0, pad_b), (0, 0), (0, 0)))
            bias = jnp.pad(bias, ((0, pad_b), (0, 0)))
        wt = jnp.transpose(w, (0, 2, 1)).reshape(grid, tb, cin, cout)   # per-sample W^T
        blk = jnp.einsum("gbio,bc->gbico", wt, eye)                     # block-diagonal
        blk = blk.reshape(grid, tb * cin, tb * cout)
        brow = bias.reshape(grid, 1, tb * cout)
        wb_arrays.append(jnp.concatenate([blk, brow], axis=1).astype(compute_dtype))

    # ---- fused 5-layer kernel --------------------------------------------
    def kernel(x_ref, wb1_ref, wb2_ref, wb3_ref, wb4_ref, wb5_ref, o_ref):
        wb_refs = (wb1_ref, wb2_ref, wb3_ref, wb4_ref, wb5_ref)
        h = x_ref[0]                                   # (S, TB*C0), compute dtype
        for li, wb_ref in enumerate(wb_refs):
            cin, cout = chans[li], chans[li + 1]
            k = tb * cin
            w = wb_ref[0, :k, :]                       # (TB*cin, TB*cout) block-diag W^T
            b = wb_ref[0, k:k + 1, :]                  # (1, TB*cout) bias row
            # one MXU matmul per layer (bf16 operands, f32 accumulation)
            y = jnp.dot(h, w, preferred_element_type=jnp.float32)
            y = y + b.astype(jnp.float32)              # VPU broadcast-add (over sublanes)
            # sigmoid via tanh -> EUP slot; stays in f32 (v5e has no bf16 EUP)
            y = 0.5 * (jnp.tanh(0.5 * y) + 1.0)
            # fc5 has no sigmoid of its own, but TargetNet ends with
            # self.sigmoid(q), so every layer effectively ends in a sigmoid.
            h = y.astype(compute_dtype) if li < 4 else y
        o_ref[0] = h.astype(o_ref.dtype)               # (S, TB)

    def full_block(a):
        return pl.BlockSpec((1,) + tuple(a.shape[1:]), lambda g: (g, 0, 0))

    in_arrays = [x_blk] + wb_arrays
    in_specs = [full_block(a) for a in in_arrays]
    out_spec = pl.BlockSpec((1, S, tb), lambda g: (g, 0, 0))
    out_shape = jax.ShapeDtypeStruct((grid, S, tb), x_nchw.dtype)

    # ---- explicit VMEM budget from the lane/sublane *padded* footprint
    def padded_bytes(shape2d, dtype):
        r, c = shape2d
        return (((r + 15) // 16) * 16) * (((c + 127) // 128) * 128) * jnp.dtype(dtype).itemsize

    blk_bytes = sum(padded_bytes(a.shape[1:], a.dtype) for a in in_arrays)
    blk_bytes += padded_bytes((S, tb), x_nchw.dtype)
    vmem_limit = int(min(48 * 1024 * 1024,                       # <= v7x 64 MiB physical
                         max(16 * 1024 * 1024, 2 * blk_bytes + 8 * 1024 * 1024)))

    out = pl.pallas_call(
        kernel,
        out_shape=out_shape,
        grid_spec=pltpu.PrefetchScalarGridSpec(
            num_scalar_prefetch=0,
            grid=(grid,),
            in_specs=in_specs,
            out_specs=out_spec,
        ),
        compiler_params=pltpu.CompilerParams(
            dimension_semantics=("parallel",),
            vmem_limit_bytes=vmem_limit,
        ),
    )(*in_arrays)

    # (grid, S, TB) -> (B, S); torch: q = l4(...).squeeze(); return sigmoid(q)
    # (the sigmoid was applied in-kernel; it commutes with reshape/squeeze).
    q = out.transpose(0, 2, 1).reshape(b_pad, S)[:B].reshape(B, 1, H, W)
    return jnp.squeeze(q)


if __name__ == "__main__":
    key = jax.random.PRNGKey(0)
    B, C0, H, W = 16, 32, 4, 4                 # small shapes; tb=16 -> grid=1
    chans = [C0, 16, 16, 8, 8, 1]              # fc1..fc5 channel chain

    keys = jax.random.split(key, 11)
    x = jax.random.normal(keys[0], (B, C0, H, W), jnp.float32)
    paras = {}
    for i in range(5):
        c_in, c_out = chans[i], chans[i + 1]
        paras[f"target_fc{i + 1}w"] = 0.1 * jax.random.normal(
            keys[1 + 2 * i], (B, c_out, c_in, 1, 1), jnp.float32)
        paras[f"target_fc{i + 1}b"] = 0.1 * jax.random.normal(
            keys[2 + 2 * i], (B, c_out), jnp.float32)

    out = jax.block_until_ready(target_net_forward(x, paras))

    # pure-JAX reference, mirroring the kernel's bf16 operand quantization
    # (matmul/bias/elementwise math in f32, like the kernel).
    def bf16_round(a):
        return a.astype(jnp.bfloat16).astype(jnp.float32)

    def ref_fc(h, w, b):
        y = jnp.einsum("boi,bihw->bohw", bf16_round(w[..., 0, 0]), h,
                       precision=jax.lax.Precision.HIGHEST)
        y = y + bf16_round(b)[:, :, None, None]
        return jax.nn.sigmoid(y)

    h = bf16_round(x)
    for i in range(1, 6):
        h = ref_fc(h, paras[f"target_fc{i}w"], paras[f"target_fc{i}b"])
        if i < 5:
            h = bf16_round(h)     # kernel casts inter-layer activations to bf16
    ref = jnp.squeeze(h)

    assert out.shape == ref.shape, (out.shape, ref.shape)
    max_err = float(jnp.max(jnp.abs(out - ref)))
    assert max_err < 1e-3, max_err
    print("KERNEL_OK")
</pallas_src>

<mosaic_0001>
module attributes {stable_mosaic.version = 11 : i64} {
  func.func @kernel(%arg0: i32, %arg1: memref<1x16x512xbf16, #tpu.memory_space<vmem>>, %arg2: memref<1x513x256xbf16, #tpu.memory_space<vmem>>, %arg3: memref<1x257x256xbf16, #tpu.memory_space<vmem>>, %arg4: memref<1x257x128xbf16, #tpu.memory_space<vmem>>, %arg5: memref<1x129x128xbf16, #tpu.memory_space<vmem>>, %arg6: memref<1x129x16xbf16, #tpu.memory_space<vmem>>, %arg7: memref<1x16x16xf32, #tpu.memory_space<vmem>>) attributes {dimension_semantics = [#tpu.dimension_semantics<parallel>], iteration_bounds = array<i64: 1>, scalar_prefetch = 0 : i64, scratch_operands = 0 : i64, tpu.core_type = #tpu.core_type<tc>, window_params = [{transform_indices = @transform_0, window_bounds = array<i64: 1, 16, 512>}, {transform_indices = @transform_1, window_bounds = array<i64: 1, 513, 256>}, {transform_indices = @transform_2, window_bounds = array<i64: 1, 257, 256>}, {transform_indices = @transform_3, window_bounds = array<i64: 1, 257, 128>}, {transform_indices = @transform_4, window_bounds = array<i64: 1, 129, 128>}, {transform_indices = @transform_5, window_bounds = array<i64: 1, 129, 16>}, {transform_indices = @transform_6, window_bounds = array<i64: 1, 16, 16>}]} {
    %c0 = arith.constant 0 : index
    %c0_0 = arith.constant 0 : index
    %c0_1 = arith.constant 0 : index
    %0 = vector.load %arg1[%c0, %c0_0, %c0_1] : memref<1x16x512xbf16, #tpu.memory_space<vmem>>, vector<1x16x512xbf16>
    %1 = vector.shape_cast %0 : vector<1x16x512xbf16> to vector<16x512xbf16>
    %c0_2 = arith.constant 0 : index
    %c0_3 = arith.constant 0 : index
    %c0_4 = arith.constant 0 : index
    %2 = vector.load %arg2[%c0_2, %c0_3, %c0_4] : memref<1x513x256xbf16, #tpu.memory_space<vmem>>, vector<1x512x256xbf16>
    %3 = vector.shape_cast %2 : vector<1x512x256xbf16> to vector<512x256xbf16>
    %c0_5 = arith.constant 0 : index
    %c512 = arith.constant 512 : index
    %c0_6 = arith.constant 0 : index
    %4 = vector.load %arg2[%c0_5, %c512, %c0_6] : memref<1x513x256xbf16, #tpu.memory_space<vmem>>, vector<1x1x256xbf16>
    %5 = vector.shape_cast %4 : vector<1x1x256xbf16> to vector<1x256xbf16>
    %cst = arith.constant dense<0.000000e+00> : vector<16x256xf32>
    %6 = tpu.matmul %1, %3, %cst {dimension_numbers = #tpu.dot_dimension_numbers<[1], [0], [0], [1], [0, 0, 1, 1], [], []>} : vector<16x512xbf16>, vector<512x256xbf16>, vector<16x256xf32> -> vector<16x256xf32>
    %7 = arith.extf %5 : vector<1x256xbf16> to vector<1x256xf32>
    %8 = vector.broadcast %7 : vector<1x256xf32> to vector<16x256xf32>
    %9 = arith.addf %6, %8 : vector<16x256xf32>
    %cst_7 = arith.constant 5.000000e-01 : f32
    %10 = vector.broadcast %cst_7 : f32 to vector<16x256xf32>
    %11 = arith.mulf %10, %9 : vector<16x256xf32>
    %12 = math.tanh %11 : vector<16x256xf32>
    %cst_8 = arith.constant 1.000000e+00 : f32
    %13 = vector.broadcast %cst_8 : f32 to vector<16x256xf32>
    %14 = arith.addf %12, %13 : vector<16x256xf32>
    %cst_9 = arith.constant 5.000000e-01 : f32
    %15 = vector.broadcast %cst_9 : f32 to vector<16x256xf32>
    %16 = arith.mulf %15, %14 : vector<16x256xf32>
    %17 = arith.truncf %16 : vector<16x256xf32> to vector<16x256xbf16>
    %c0_10 = arith.constant 0 : index
    %c0_11 = arith.constant 0 : index
    %c0_12 = arith.constant 0 : index
    %18 = vector.load %arg3[%c0_10, %c0_11, %c0_12] : memref<1x257x256xbf16, #tpu.memory_space<vmem>>, vector<1x256x256xbf16>
    %19 = vector.shape_cast %18 : vector<1x256x256xbf16> to vector<256x256xbf16>
    %c0_13 = arith.constant 0 : index
    %c256 = arith.constant 256 : index
    %c0_14 = arith.constant 0 : index
    %20 = vector.load %arg3[%c0_13, %c256, %c0_14] : memref<1x257x256xbf16, #tpu.memory_space<vmem>>, vector<1x1x256xbf16>
    %21 = vector.shape_cast %20 : vector<1x1x256xbf16> to vector<1x256xbf16>
    %cst_15 = arith.constant dense<0.000000e+00> : vector<16x256xf32>
    %22 = tpu.matmul %17, %19, %cst_15 {dimension_numbers = #tpu.dot_dimension_numbers<[1], [0], [0], [1], [0, 0, 1, 1], [], []>} : vector<16x256xbf16>, vector<256x256xbf16>, vector<16x256xf32> -> vector<16x256xf32>
    %23 = arith.extf %21 : vector<1x256xbf16> to vector<1x256xf32>
    %24 = vector.broadcast %23 : vector<1x256xf32> to vector<16x256xf32>
    %25 = arith.addf %22, %24 : vector<16x256xf32>
    %cst_16 = arith.constant 5.000000e-01 : f32
    %26 = vector.broadcast %cst_16 : f32 to vector<16x256xf32>
    %27 = arith.mulf %26, %25 : vector<16x256xf32>
    %28 = math.tanh %27 : vector<16x256xf32>
    %cst_17 = arith.constant 1.000000e+00 : f32
    %29 = vector.broadcast %cst_17 : f32 to vector<16x256xf32>
    %30 = arith.addf %28, %29 : vector<16x256xf32>
    %cst_18 = arith.constant 5.000000e-01 : f32
    %31 = vector.broadcast %cst_18 : f32 to vector<16x256xf32>
    %32 = arith.mulf %31, %30 : vector<16x256xf32>
    %33 = arith.truncf %32 : vector<16x256xf32> to vector<16x256xbf16>
    %c0_19 = arith.constant 0 : index
    %c0_20 = arith.constant 0 : index
    %c0_21 = arith.constant 0 : index
    %34 = vector.load %arg4[%c0_19, %c0_20, %c0_21] : memref<1x257x128xbf16, #tpu.memory_space<vmem>>, vector<1x256x128xbf16>
    %35 = vector.shape_cast %34 : vector<1x256x128xbf16> to vector<256x128xbf16>
    %c0_22 = arith.constant 0 : index
    %c256_23 = arith.constant 256 : index
    %c0_24 = arith.constant 0 : index
    %36 = vector.load %arg4[%c0_22, %c256_23, %c0_24] : memref<1x257x128xbf16, #tpu.memory_space<vmem>>, vector<1x1x128xbf16>
    %37 = vector.shape_cast %36 : vector<1x1x128xbf16> to vector<1x128xbf16>
    %cst_25 = arith.constant dense<0.000000e+00> : vector<16x128xf32>
    %38 = tpu.matmul %33, %35, %cst_25 {dimension_numbers = #tpu.dot_dimension_numbers<[1], [0], [0], [1], [0, 0, 1, 1], [], []>} : vector<16x256xbf16>, vector<256x128xbf16>, vector<16x128xf32> -> vector<16x128xf32>
    %39 = arith.extf %37 : vector<1x128xbf16> to vector<1x128xf32>
    %40 = vector.broadcast %39 : vector<1x128xf32> to vector<16x128xf32>
    %41 = arith.addf %38, %40 : vector<16x128xf32>
    %cst_26 = arith.constant 5.000000e-01 : f32
    %42 = vector.broadcast %cst_26 : f32 to vector<16x128xf32>
    %43 = arith.mulf %42, %41 : vector<16x128xf32>
    %44 = math.tanh %43 : vector<16x128xf32>
    %cst_27 = arith.constant 1.000000e+00 : f32
    %45 = vector.broadcast %cst_27 : f32 to vector<16x128xf32>
    %46 = arith.addf %44, %45 : vector<16x128xf32>
    %cst_28 = arith.constant 5.000000e-01 : f32
    %47 = vector.broadcast %cst_28 : f32 to vector<16x128xf32>
    %48 = arith.mulf %47, %46 : vector<16x128xf32>
    %49 = arith.truncf %48 : vector<16x128xf32> to vector<16x128xbf16>
    %c0_29 = arith.constant 0 : index
    %c0_30 = arith.constant 0 : index
    %c0_31 = arith.constant 0 : index
    %50 = vector.load %arg5[%c0_29, %c0_30, %c0_31] : memref<1x129x128xbf16, #tpu.memory_space<vmem>>, vector<1x128x128xbf16>
    %51 = vector.shape_cast %50 : vector<1x128x128xbf16> to vector<128x128xbf16>
    %c0_32 = arith.constant 0 : index
    %c128 = arith.constant 128 : index
    %c0_33 = arith.constant 0 : index
    %52 = vector.load %arg5[%c0_32, %c128, %c0_33] : memref<1x129x128xbf16, #tpu.memory_space<vmem>>, vector<1x1x128xbf16>
    %53 = vector.shape_cast %52 : vector<1x1x128xbf16> to vector<1x128xbf16>
    %cst_34 = arith.constant dense<0.000000e+00> : vector<16x128xf32>
    %54 = tpu.matmul %49, %51, %cst_34 {dimension_numbers = #tpu.dot_dimension_numbers<[1], [0], [0], [1], [0, 0, 1, 1], [], []>} : vector<16x128xbf16>, vector<128x128xbf16>, vector<16x128xf32> -> vector<16x128xf32>
    %55 = arith.extf %53 : vector<1x128xbf16> to vector<1x128xf32>
    %56 = vector.broadcast %55 : vector<1x128xf32> to vector<16x128xf32>
    %57 = arith.addf %54, %56 : vector<16x128xf32>
    %cst_35 = arith.constant 5.000000e-01 : f32
    %58 = vector.broadcast %cst_35 : f32 to vector<16x128xf32>
    %59 = arith.mulf %58, %57 : vector<16x128xf32>
    %60 = math.tanh %59 : vector<16x128xf32>
    %cst_36 = arith.constant 1.000000e+00 : f32
    %61 = vector.broadcast %cst_36 : f32 to vector<16x128xf32>
    %62 = arith.addf %60, %61 : vector<16x128xf32>
    %cst_37 = arith.constant 5.000000e-01 : f32
    %63 = vector.broadcast %cst_37 : f32 to vector<16x128xf32>
    %64 = arith.mulf %63, %62 : vector<16x128xf32>
    %65 = arith.truncf %64 : vector<16x128xf32> to vector<16x128xbf16>
    %c0_38 = arith.constant 0 : index
    %c0_39 = arith.constant 0 : index
    %c0_40 = arith.constant 0 : index
    %66 = vector.load %arg6[%c0_38, %c0_39, %c0_40] : memref<1x129x16xbf16, #tpu.memory_space<vmem>>, vector<1x128x16xbf16>
    %67 = vector.shape_cast %66 : vector<1x128x16xbf16> to vector<128x16xbf16>
    %c0_41 = arith.constant 0 : index
    %c128_42 = arith.constant 128 : index
    %c0_43 = arith.constant 0 : index
    %68 = vector.load %arg6[%c0_41, %c128_42, %c0_43] : memref<1x129x16xbf16, #tpu.memory_space<vmem>>, vector<1x1x16xbf16>
    %69 = vector.shape_cast %68 : vector<1x1x16xbf16> to vector<1x16xbf16>
    %cst_44 = arith.constant dense<0.000000e+00> : vector<16x16xf32>
    %70 = tpu.matmul %65, %67, %cst_44 {dimension_numbers = #tpu.dot_dimension_numbers<[1], [0], [0], [1], [0, 0, 1, 1], [], []>} : vector<16x128xbf16>, vector<128x16xbf16>, vector<16x16xf32> -> vector<16x16xf32>
    %71 = arith.extf %69 : vector<1x16xbf16> to vector<1x16xf32>
    %72 = vector.broadcast %71 : vector<1x16xf32> to vector<16x16xf32>
    %73 = arith.addf %70, %72 : vector<16x16xf32>
    %cst_45 = arith.constant 5.000000e-01 : f32
    %74 = vector.broadcast %cst_45 : f32 to vector<16x16xf32>
    %75 = arith.mulf %74, %73 : vector<16x16xf32>
    %76 = math.tanh %75 : vector<16x16xf32>
    %cst_46 = arith.constant 1.000000e+00 : f32
    %77 = vector.broadcast %cst_46 : f32 to vector<16x16xf32>
    %78 = arith.addf %76, %77 : vector<16x16xf32>
    %cst_47 = arith.constant 5.000000e-01 : f32
    %79 = vector.broadcast %cst_47 : f32 to vector<16x16xf32>
    %80 = arith.mulf %79, %78 : vector<16x16xf32>
    %c0_48 = arith.constant 0 : index
    %c0_49 = arith.constant 0 : index
    %c0_50 = arith.constant 0 : index
    %81 = vector.load %arg7[%c0_48, %c0_49, %c0_50] : memref<1x16x16xf32, #tpu.memory_space<vmem>>, vector<1x16x16xf32>
    %82 = vector.shape_cast %81 : vector<1x16x16xf32> to vector<16x16xf32>
    %83 = vector.shape_cast %80 : vector<16x16xf32> to vector<1x16x16xf32>
    tpu.vector_store %arg7[%c0_48, %c0_49, %c0_50], %83 {strides = array<i32>} : memref<1x16x16xf32, #tpu.memory_space<vmem>>, vector<1x16x16xf32>,
    return
  }
  func.func @transform_0(%arg0: i32) -> (i32, i32, i32) {
    %c0_i32 = arith.constant 0 : i32
    %c0_i32_0 = arith.constant 0 : i32
    %c0_i32_1 = arith.constant 0 : i32
    return %arg0, %c0_i32, %c0_i32_0 : i32, i32, i32
  }
  func.func @transform_1(%arg0: i32) -> (i32, i32, i32) {
    %c0_i32 = arith.constant 0 : i32
    %c0_i32_0 = arith.constant 0 : i32
    %c0_i32_1 = arith.constant 0 : i32
    return %arg0, %c0_i32, %c0_i32_0 : i32, i32, i32
  }
  func.func @transform_2(%arg0: i32) -> (i32, i32, i32) {
    %c0_i32 = arith.constant 0 : i32
    %c0_i32_0 = arith.constant 0 : i32
    %c0_i32_1 = arith.constant 0 : i32
    return %arg0, %c0_i32, %c0_i32_0 : i32, i32, i32
  }
  func.func @transform_3(%arg0: i32) -> (i32, i32, i32) {
    %c0_i32 = arith.constant 0 : i32
    %c0_i32_0 = arith.constant 0 : i32
    %c0_i32_1 = arith.constant 0 : i32
    return %arg0, %c0_i32, %c0_i32_0 : i32, i32, i32
  }
  func.func @transform_4(%arg0: i32) -> (i32, i32, i32) {
    %c0_i32 = arith.constant 0 : i32
    %c0_i32_0 = arith.constant 0 : i32
    %c0_i32_1 = arith.constant 0 : i32
    return %arg0, %c0_i32, %c0_i32_0 : i32, i32, i32
  }
  func.func @transform_5(%arg0: i32) -> (i32, i32, i32) {
    %c0_i32 = arith.constant 0 : i32
    %c0_i32_0 = arith.constant 0 : i32
    %c0_i32_1 = arith.constant 0 : i32
    return %arg0, %c0_i32, %c0_i32_0 : i32, i32, i32
  }
  func.func @transform_6(%arg0: i32) -> (i32, i32, i32) {
    %c0_i32 = arith.constant 0 : i32
    %c0_i32_0 = arith.constant 0 : i32
    %c0_i32_1 = arith.constant 0 : i32
    return %arg0, %c0_i32, %c0_i32_0 : i32, i32, i32
  }
}

</mosaic_0001>

<bundles_post_ra>
// kernel: tpu_custom_call.1
= control target key start
LH: loop header
LB: loop body
LE: loop exit
PB: predicated region body
PF: predicated region fallthrough
CT: control target
= control target key end

     0   :  { %11 = vsyncpa [#allocation3], 0  ;;  %s2243_s0 = inlined_call_operand.hbm [shape: bf16[1,16,512], index: 0, kind: input, shape index: {}]   ;;  %s2244_s1 = inlined_call_operand.hbm [shape: bf16[1,513,256], index: 1, kind: input, shape index: {}]   ;;  %s2245_s2 = inlined_call_operand.hbm [shape: bf16[1,257,256], index: 2, kind: input, shape index: {}]   ;;  %s2246_s3 = inlined_call_operand.hbm [shape: bf16[1,257,128], index: 3, kind: input, shape index: {}]   ;;  %s2247_s4 = inlined_call_operand.vmem [shape: bf16[1,129,128], index: 4, kind: input, shape index: {}]   ;;  %s2248_s5 = inlined_call_operand.vmem [shape: bf16[1,129,16], index: 5, kind: input, shape index: {}]   ;;  %s2249_s6 = inlined_call_operand.hbm [shape: f32[1,16,16], index: 6, kind: output, shape index: {}]  }
   0x1   :  { %12 = vsyncpa [#allocation6], 0 }
   0x2   :  { %13 = vsyncpa [#allocation9], 0  ;;  %s32_s23 = sshll.u32 %s2244_s1, 4  ;;  %s33_s23 = int_to_ptr.hbm [resolvable:$true] %s32_s23 }
   0x3   :  { %14 = vsyncpa [#allocation4], 0  ;;  %s2099_s24 = smov [#allocation5]   ;;  %s19_s28 = sshll.u32 %s2243_s0, 4  ;;  %s20_s28 = int_to_ptr.hbm [resolvable:$true] %s19_s28 }
   0x4   :  { %s34_s25 = sshll.u32 %s2099_s24, 4  ;;  %s2100_s29 = smov 128   ;;  %s35_s25 = int_to_ptr.vmem [resolvable:$true] %s34_s25 }
   0x5   :  { %s2101_s30 = smov 8   ;;  %s2102_s7 = smov [#allocation2]  }
   0x6   :  { %40 = dma.hbm_to_vmem [thread:$0]  %s33_s23, 8320, %s35_s25, [#allocation6], %s2100_s29, %s2100_s29, %s2101_s30  }
   0x7   :  { %s21_s8 = sshll.u32 %s2102_s7, 4  ;;  %s2103_s1 = smov 256   ;;  %s22_s8 = int_to_ptr.vmem [resolvable:$true] %s21_s8 }
   0x8   :  { %s2104_s9 = smov 16   ;;  %s45_s12 = sshll.u32 %s2245_s2, 4  ;;  %s46_s12 = int_to_ptr.hbm [resolvable:$true] %s45_s12 }
   0x9   :  { %27 = dma.hbm_to_vmem [thread:$0]  %s20_s28, 512, %s22_s8, [#allocation3], %s2103_s1, %s2103_s1, %s2104_s9  }
   0xa   :  { %s2105_s13 = smov [#allocation7]   ;;  %s58_s16 = sshll.u32 %s2246_s3, 4  ;;  %s59_s16 = int_to_ptr.hbm [resolvable:$true] %s58_s16 }
   0xb   :  { %s47_s0 = sshll.u32 %s2105_s13, 4  ;;  %s2106_s17 = smov [#allocation8]   ;;  %s48_s0 = int_to_ptr.vmem [resolvable:$true] %s47_s0 }
   0xc   :  { %53 = dma.hbm_to_vmem [thread:$0]  %s46_s12, 4224, %s48_s0, [#allocation6], %s2100_s29, %s2100_s29, %s2101_s30  }
   0xd   :  { %s60_s18 = sshll.u32 %s2106_s17, 4  ;;  %s2107_s19 = smov 64   ;;  %s61_s18 = int_to_ptr.vmem [resolvable:$true] %s60_s18 }
   0xe   :  { %s2108_s20 = smov 4  }
   0xf   :  { %66 = dma.hbm_to_vmem [thread:$0]  %s59_s16, 2112, %s61_s18, [#allocation9], %s2107_s19, %s2107_s19, %s2108_s20  }
  0x10   :  { %2091 = dma.done.wait [#allocation3], 512  }
  0x11   :  { %2092 = vsyncadd [#allocation3], 4294966784 }
  0x12   :  { %2093 = dma.done.wait [#allocation6], 12544  }
  0x13   :  { %2094 = vsyncadd [#allocation6], 4294954752 }
  0x14   :  { %2095 = dma.done.wait [#allocation9], 2112  }
  0x15   :  { %2096 = vsyncadd [#allocation9], 4294965184  ;;  %v1346_v0 = vld [vmem:[#allocation5 + $0x70] sm:$0xf]  ;;  %v1819_v1 = vld [vmem:[#allocation5 + $0x74] sm:$0xf0] }
  0x16   :  { %v1410_v2 = vld [vmem:[#allocation5 + $0xf0] sm:$0xf]  ;;  %v1347_v3 = vor.u32 %v1819_v1, %v1346_v0  ;;  %v1835_v4 = vld [vmem:[#allocation5 + $0xf4] sm:$0xf0]  ;;  %v1338_v11 = vld [vmem:[#allocation5 + $0x60] sm:$0xf] }
  0x17   :  { %v1474_v5 = vld [vmem:[#allocation5 + $0x170] sm:$0xf]  ;;  %v1851_v6 = vld [vmem:[#allocation5 + $0x174] sm:$0xf0]  ;;  %v1411_v7 = vor.u32 %v1835_v4, %v1410_v2  ;;  %v1817_v13 = vld [vmem:[#allocation5 + $0x64] sm:$0xf0] }
  0x18   :  { %v1475_v8 = vor.u32 %v1851_v6, %v1474_v5  ;;  %v1538_v9 = vld [vmem:[#allocation5 + $0x1f0] sm:$0xf]  ;;  %v1867_v10 = vld [vmem:[#allocation5 + $0x1f4] sm:$0xf0]  ;;  %500 = vmatpush.bf16.msra.mxu0 %v1347_v3  ;;  %v1402_v14 = vld [vmem:[#allocation5 + $0xe0] sm:$0xf]  ;;  %v1339_v16 = vor.u32 %v1817_v13, %v1338_v11 }
  0x19   :  { %v1539_v12 = vor.u32 %v1867_v10, %v1538_v9  ;;  %v1833_v15 = vld [vmem:[#allocation5 + $0xe4] sm:$0xf0]  ;;  %514 = vmatpush.bf16.msra.mxu1 %v1411_v7  ;;  %v1466_v18 = vld [vmem:[#allocation5 + $0x160] sm:$0xf]  ;;  %v1330_v23 = vld [vmem:[#allocation5 + $0x50] sm:$0xf] }
  0x1a   :  { %528 = vmatpush.bf16.msra.mxu2 %v1475_v8  ;;  %v1403_v17 = vor.u32 %v1833_v15, %v1402_v14  ;;  %v1849_v19 = vld [vmem:[#allocation5 + $0x164] sm:$0xf0]  ;;  %v1530_v20 = vld [vmem:[#allocation5 + $0x1e0] sm:$0xf]  ;;  %v1815_v24 = vld [vmem:[#allocation5 + $0x54] sm:$0xf0] }
  0x1b   :  { %542 = vmatpush.bf16.msra.mxu3 %v1539_v12  ;;  %v1467_v21 = vor.u32 %v1849_v19, %v1466_v18  ;;  %v1865_v22 = vld [vmem:[#allocation5 + $0x1e4] sm:$0xf0]  ;;  %v1394_v26 = vld [vmem:[#allocation5 + $0xd0] sm:$0xf]  ;;  %v1831_v27 = vld [vmem:[#allocation5 + $0xd4] sm:$0xf0]  ;;  %v1331_v29 = vor.u32 %v1815_v24, %v1330_v23 }
  0x1c   :  { %v1531_v25 = vor.u32 %v1865_v22, %v1530_v20  ;;  %v1458_v28 = vld [vmem:[#allocation5 + $0x150] sm:$0xf]  ;;  %501 = vmatpush.bf16.msra.mxu0 %v1339_v16  ;;  %v1847_v30 = vld [vmem:[#allocation5 + $0x154] sm:$0xf0]  ;;  %v1395_v33 = vor.u32 %v1831_v27, %v1394_v26  ;;  %v1322_v35 = vld [vmem:[#allocation5 + $0x40] sm:$0xf] }
  0x1d   :  { %v1522_v31 = vld [vmem:[#allocation5 + $0x1d0] sm:$0xf]  ;;  %v1863_v32 = vld [vmem:[#allocation5 + $0x1d4] sm:$0xf0]  ;;  %515 = vmatpush.bf16.msra.mxu1 %v1403_v17  ;;  %v1459_v34 = vor.u32 %v1847_v30, %v1458_v28  ;;  %v1813_v36 = vld [vmem:[#allocation5 + $0x44] sm:$0xf0] }
  0x1e   :  { %529 = vmatpush.bf16.msra.mxu2 %v1467_v21  ;;  %v1386_v37 = vld [vmem:[#allocation5 + $0xc0] sm:$0xf]  ;;  %v1523_v38 = vor.u32 %v1863_v32, %v1522_v31  ;;  %v1829_v39 = vld [vmem:[#allocation5 + $0xc4] sm:$0xf0]  ;;  %v1323_v44 = vor.u32 %v1813_v36, %v1322_v35  ;;  %v1314_v47 = vld [vmem:[#allocation5 + $0x30] sm:$0xf] }
  0x1f   :  { %543 = vmatpush.bf16.msra.mxu3 %v1531_v25  ;;  %v1450_v40 = vld [vmem:[#allocation5 + $0x140] sm:$0xf]  ;;  %v1845_v41 = vld [vmem:[#allocation5 + $0x144] sm:$0xf0]  ;;  %v1387_v45 = vor.u32 %v1829_v39, %v1386_v37  ;;  %v1811_v48 = vld [vmem:[#allocation5 + $0x34] sm:$0xf0] }
  0x20   :  { %v1514_v42 = vld [vmem:[#allocation5 + $0x1c0] sm:$0xf]  ;;  %v1861_v43 = vld [vmem:[#allocation5 + $0x1c4] sm:$0xf0]  ;;  %502 = vmatpush.bf16.msra.mxu0 %v1331_v29  ;;  %v1451_v46 = vor.u32 %v1845_v41, %v1450_v40  ;;  %v1378_v49 = vld [vmem:[#allocation5 + $0xb0] sm:$0xf]  ;;  %v1315_v56 = vor.u32 %v1811_v48, %v1314_v47 }
  0x21   :  { %516 = vmatpush.bf16.msra.mxu1 %v1395_v33  ;;  %v1515_v50 = vor.u32 %v1861_v43, %v1514_v42  ;;  %v1827_v51 = vld [vmem:[#allocation5 + $0xb4] sm:$0xf0]  ;;  %v1442_v52 = vld [vmem:[#allocation5 + $0x130] sm:$0xf]  ;;  %v1306_v59 = vld [vmem:[#allocation5 + $0x20] sm:$0xf] }
  0x22   :  { %530 = vmatpush.bf16.msra.mxu2 %v1459_v34  ;;  %v1843_v53 = vld [vmem:[#allocation5 + $0x134] sm:$0xf0]  ;;  %v1506_v54 = vld [vmem:[#allocation5 + $0x1b0] sm:$0xf]  ;;  %v1379_v57 = vor.u32 %v1827_v51, %v1378_v49  ;;  %v1809_v60 = vld [vmem:[#allocation5 + $0x24] sm:$0xf0] }
  0x23   :  { %544 = vmatpush.bf16.msra.mxu3 %v1523_v38  ;;  %v1859_v55 = vld [vmem:[#allocation5 + $0x1b4] sm:$0xf0]  ;;  %v1443_v58 = vor.u32 %v1843_v53, %v1442_v52  ;;  %v1370_v61 = vld [vmem:[#allocation5 + $0xa0] sm:$0xf]  ;;  %v1825_v63 = vld [vmem:[#allocation5 + $0xa4] sm:$0xf0]  ;;  %v1307_v4 = vor.u32 %v1809_v60, %v1306_v59 }
  0x24   :  { %503 = vmatpush.bf16.msra.mxu0 %v1323_v44  ;;  %v1507_v62 = vor.u32 %v1859_v55, %v1506_v54  ;;  %v1434_v0 = vld [vmem:[#allocation5 + $0x120] sm:$0xf]  ;;  %v1841_v1 = vld [vmem:[#allocation5 + $0x124] sm:$0xf0]  ;;  %v1298_v5 = vld [vmem:[#allocation5 + $0x10] sm:$0xf]  ;;  %v1371_v6 = vor.u32 %v1825_v63, %v1370_v61 }
  0x25   :  { %517 = vmatpush.bf16.msra.mxu1 %v1387_v45  ;;  %v1498_v2 = vld [vmem:[#allocation5 + $0x1a0] sm:$0xf]  ;;  %v1857_v3 = vld [vmem:[#allocation5 + $0x1a4] sm:$0xf0]  ;;  %v1435_v7 = vor.u32 %v1841_v1, %v1434_v0  ;;  %v1807_v8 = vld [vmem:[#allocation5 + $0x14] sm:$0xf0] }
  0x26   :  { %531 = vmatpush.bf16.msra.mxu2 %v1451_v46  ;;  %v1362_v9 = vld [vmem:[#allocation5 + $0x90] sm:$0xf]  ;;  %v1823_v10 = vld [vmem:[#allocation5 + $0x94] sm:$0xf0]  ;;  %v1499_v11 = vor.u32 %v1857_v3, %v1498_v2  ;;  %v1290_v16 = vld [vmem:[#allocation5] sm:$0xf]  ;;  %v1299_v18 = vor.u32 %v1807_v8, %v1298_v5 }
  0x27   :  { %545 = vmatpush.bf16.msra.mxu3 %v1515_v50  ;;  %v1426_v12 = vld [vmem:[#allocation5 + $0x110] sm:$0xf]  ;;  %v1839_v13 = vld [vmem:[#allocation5 + $0x114] sm:$0xf0]  ;;  %v1805_v17 = vld [vmem:[#allocation5 + $0x4] sm:$0xf0]  ;;  %v1363_v23 = vor.u32 %v1823_v10, %v1362_v9 }
  0x28   :  { %504 = vmatpush.bf16.msra.mxu0 %v1315_v56  ;;  %v1490_v14 = vld [vmem:[#allocation5 + $0x190] sm:$0xf]  ;;  %v1855_v15 = vld [vmem:[#allocation5 + $0x194] sm:$0xf0]  ;;  %v1354_v19 = vld [vmem:[#allocation5 + $0x80] sm:$0xf]  ;;  %v1427_v24 = vor.u32 %v1839_v13, %v1426_v12  ;;  %v1291_v35 = vor.u32 %v1805_v17, %v1290_v16 }
  0x29   :  { %518 = vmatpush.bf16.msra.mxu1 %v1379_v57  ;;  %v1821_v20 = vld [vmem:[#allocation5 + $0x84] sm:$0xf0]  ;;  %v1418_v21 = vld [vmem:[#allocation5 + $0x100] sm:$0xf]  ;;  %v1818_v27 = vld [vmem:[#allocation5 + $0x74] sm:$0xf]  ;;  %v1491_v28 = vor.u32 %v1855_v15, %v1490_v14 }
  0x2a   :  { %532 = vmatpush.bf16.msra.mxu2 %v1443_v58  ;;  %v1837_v22 = vld [vmem:[#allocation5 + $0x104] sm:$0xf0]  ;;  %v1482_v25 = vld [vmem:[#allocation5 + $0x180] sm:$0xf]  ;;  %v1348_v29 = vld [vmem:[#allocation5 + $0x78] sm:$0xf0]  ;;  %v1355_v39 = vor.u32 %v1821_v20, %v1354_v19 }
  0x2b   :  { %546 = vmatpush.bf16.msra.mxu3 %v1507_v62  ;;  %v1853_v26 = vld [vmem:[#allocation5 + $0x184] sm:$0xf0]  ;;  %v1834_v30 = vld [vmem:[#allocation5 + $0xf4] sm:$0xf]  ;;  %v1412_v31 = vld [vmem:[#allocation5 + $0xf8] sm:$0xf0]  ;;  %v1419_v40 = vor.u32 %v1837_v22, %v1418_v21  ;;  %v1351_v45 = vor.u32 %v1818_v27, %v1348_v29 }
  0x2c   :  { %505 = vmatpush.bf16.msra.mxu0 %v1307_v4  ;;  %v1850_v32 = vld [vmem:[#allocation5 + $0x174] sm:$0xf]  ;;  %v1476_v33 = vld [vmem:[#allocation5 + $0x178] sm:$0xf0]  ;;  %v1282_v37 = vld [vmem:[#allocation2 + $0x8] sm:$0xf]  ;;  %v1483_v44 = vor.u32 %v1853_v26, %v1482_v25  ;;  %v1415_v49 = vor.u32 %v1834_v30, %v1412_v31 }
  0x2d   :  { %519 = vmatpush.bf16.msra.mxu1 %v1371_v6  ;;  %v1866_v34 = vld [vmem:[#allocation5 + $0x1f4] sm:$0xf]  ;;  %v1540_v36 = vld [vmem:[#allocation5 + $0x1f8] sm:$0xf0]  ;;  %v1803_v38 = vld [vmem:[#allocation2 + $0x14] sm:$0xf0]  ;;  %v1479_v50 = vor.u32 %v1850_v32, %v1476_v33 }
  0x2e   :  { %533 = vmatpush.bf16.msra.mxu2 %v1435_v7  ;;  %v1274_v41 = vld [vmem:[#allocation2] sm:$0xf]  ;;  %v1802_v42 = vld [vmem:[#allocation2 + $0xc] sm:$0xf0]  ;;  %v1801_v43 = vld [vmem:[#allocation2 + $0xc] sm:$0xf]  ;;  %v1543_v54 = vor.u32 %v1866_v34, %v1540_v36  ;;  %v2163_v55 = vor.u32 %v1803_v38, %v1282_v37 }
  0x2f   :  { %547 = vmatpush.bf16.msra.mxu3 %v1499_v11  ;;  %v1284_v46 = vld [vmem:[#allocation2 + $0x18] sm:$0xf0]  ;;  %v1816_v47 = vld [vmem:[#allocation5 + $0x64] sm:$0xf]  ;;  %v1340_v48 = vld [vmem:[#allocation5 + $0x68] sm:$0xf0]  ;;  %v2165_v59 = vor.u32 %v1802_v42, %v1274_v41 }
  0x30   :  { %506 = vmatpush.bf16.msra.mxu0 %v1299_v18  ;;  %v1832_v51 = vld [vmem:[#allocation5 + $0xe4] sm:$0xf]  ;;  %v1276_v53 = vld [vmem:[#allocation2 + $0x10] sm:$0xf0]  ;;  %v1404_v56 = vld [vmem:[#allocation5 + $0xe8] sm:$0xf0]  ;;  %v2167_v60 = vor.u32 %v1801_v43, %v1284_v46  ;;  %v1343_v63 = vor.u32 %v1816_v47, %v1340_v48 }
  0x31   :  { %520 = vmatpush.bf16.msra.mxu1 %v1363_v23  ;;  %v1800_v52 = vld [vmem:[#allocation2 + $0x4] sm:$0xf]  ;;  %v1468_v58 = vld [vmem:[#allocation5 + $0x168] sm:$0xf0]  ;;  %v1407_v1 = vor.u32 %v1832_v51, %v1404_v56  ;;  %v1814_v3 = vld [vmem:[#allocation5 + $0x54] sm:$0xf] }
  0x32   :  { %534 = vmatpush.bf16.msra.mxu2 %v1427_v24  ;;  %v1848_v57 = vld [vmem:[#allocation5 + $0x164] sm:$0xf]  ;;  %v1532_v62 = vld [vmem:[#allocation5 + $0x1e8] sm:$0xf0]  ;;  %v2169_v0 = vor.u32 %v1800_v52, %v1276_v53  ;;  %v1332_v4 = vld [vmem:[#allocation5 + $0x58] sm:$0xf0] }
  0x33   :  { %548 = vmatpush.bf16.msra.mxu3 %v1491_v28  ;;  %v1864_v61 = vld [vmem:[#allocation5 + $0x1e4] sm:$0xf]  ;;  %v1471_v2 = vor.u32 %v1848_v57, %v1468_v58  ;;  %v1830_v5 = vld [vmem:[#allocation5 + $0xd4] sm:$0xf]  ;;  %v1396_v7 = vld [vmem:[#allocation5 + $0xd8] sm:$0xf0]  ;;  %v1335_v12 = vor.u32 %v1814_v3, %v1332_v4 }
  0x34   :  { %507 = vmatpush.bf16.msra.mxu0 %v1291_v35  ;;  %v1535_v6 = vor.u32 %v1864_v61, %v1532_v62  ;;  %v1846_v8 = vld [vmem:[#allocation5 + $0x154] sm:$0xf]  ;;  %v1460_v9 = vld [vmem:[#allocation5 + $0x158] sm:$0xf0]  ;;  %v1399_v13 = vor.u32 %v1830_v5, %v1396_v7  ;;  %v1812_v15 = vld [vmem:[#allocation5 + $0x44] sm:$0xf] }
  0x35   :  { %521 = vmatpush.bf16.msra.mxu1 %v1355_v39  ;;  %v1862_v10 = vld [vmem:[#allocation5 + $0x1d4] sm:$0xf]  ;;  %v1524_v11 = vld [vmem:[#allocation5 + $0x1d8] sm:$0xf0]  ;;  %v1463_v14 = vor.u32 %v1846_v8, %v1460_v9  ;;  %v1324_v16 = vld [vmem:[#allocation5 + $0x48] sm:$0xf0] }
  0x36   :  { %535 = vmatpush.bf16.msra.mxu2 %v1419_v40  ;;  %v1828_v17 = vld [vmem:[#allocation5 + $0xc4] sm:$0xf]  ;;  %v1527_v18 = vor.u32 %v1862_v10, %v1524_v11  ;;  %v1388_v19 = vld [vmem:[#allocation5 + $0xc8] sm:$0xf0]  ;;  %v1327_v24 = vor.u32 %v1812_v15, %v1324_v16  ;;  %v1810_v27 = vld [vmem:[#allocation5 + $0x34] sm:$0xf] }
  0x37   :  { %549 = vmatpush.bf16.msra.mxu3 %v1483_v44  ;;  %508 = vmatmul.bf16.vlgmr.msra.gmra.mxu0 %v2165_v59  ;;  %v1844_v20 = vld [vmem:[#allocation5 + $0x144] sm:$0xf]  ;;  %v1452_v21 = vld [vmem:[#allocation5 + $0x148] sm:$0xf0]  ;;  %v1391_v25 = vor.u32 %v1828_v17, %v1388_v19  ;;  %v1316_v28 = vld [vmem:[#allocation5 + $0x38] sm:$0xf0] }
  0x38   :  { %556 = vmatpush.bf16.msrb.mxu0 %v1351_v45  ;;  %522 = vmatmul.bf16.vlgmr.msra.gmra.mxu1 %v2169_v0  ;;  %v1860_v22 = vld [vmem:[#allocation5 + $0x1c4] sm:$0xf]  ;;  %v1516_v23 = vld [vmem:[#allocation5 + $0x1c8] sm:$0xf0]  ;;  %v1455_v26 = vor.u32 %v1844_v20, %v1452_v21  ;;  %v1826_v29 = vld [vmem:[#allocation5 + $0xb4] sm:$0xf]  ;;  %v1319_v36 = vor.u32 %v1810_v27, %v1316_v28 }
  0x39   :  { %570 = vmatpush.bf16.msrb.mxu1 %v1415_v49  ;;  %536 = vmatmul.bf16.vlgmr.msra.gmra.mxu2 %v2163_v55  ;;  %v1519_v30 = vor.u32 %v1860_v22, %v1516_v23  ;;  %v1380_v31 = vld [vmem:[#allocation5 + $0xb8] sm:$0xf0]  ;;  %v1842_v32 = vld [vmem:[#allocation5 + $0x134] sm:$0xf]  ;;  %v1808_v39 = vld [vmem:[#allocation5 + $0x24] sm:$0xf] }
  0x3a   :  { %584 = vmatpush.bf16.msrb.mxu2 %v1479_v50  ;;  %550 = vmatmul.bf16.vlgmr.msra.gmra.mxu3 %v2167_v60  ;;  %v1444_v33 = vld [vmem:[#allocation5 + $0x138] sm:$0xf0]  ;;  %v1858_v34 = vld [vmem:[#allocation5 + $0x1b4] sm:$0xf]  ;;  %v1383_v37 = vor.u32 %v1826_v29, %v1380_v31  ;;  %v1308_v40 = vld [vmem:[#allocation5 + $0x28] sm:$0xf0] }
  0x3b   :  { %598 = vmatpush.bf16.msrb.mxu3 %v1543_v54  ;;  %v1508_v35 = vld [vmem:[#allocation5 + $0x1b8] sm:$0xf0]  ;;  %v1447_v38 = vor.u32 %v1842_v32, %v1444_v33  ;;  %v1824_v41 = vld [vmem:[#allocation5 + $0xa4] sm:$0xf]  ;;  %v1372_v43 = vld [vmem:[#allocation5 + $0xa8] sm:$0xf0]  ;;  %v1311_v48 = vor.u32 %v1808_v39, %v1308_v40 }
  0x3c   :  { %557 = vmatpush.bf16.msrb.mxu0 %v1343_v63  ;;  %v1511_v42 = vor.u32 %v1858_v34, %v1508_v35  ;;  %v1840_v44 = vld [vmem:[#allocation5 + $0x124] sm:$0xf]  ;;  %v1436_v45 = vld [vmem:[#allocation5 + $0x128] sm:$0xf0]  ;;  %v1375_v49 = vor.u32 %v1824_v41, %v1372_v43  ;;  %v1806_v51 = vld [vmem:[#allocation5 + $0x14] sm:$0xf] }
  0x3d   :  { %571 = vmatpush.bf16.msrb.mxu1 %v1407_v1  ;;  %v1856_v46 = vld [vmem:[#allocation5 + $0x1a4] sm:$0xf]  ;;  %v1500_v47 = vld [vmem:[#allocation5 + $0x1a8] sm:$0xf0]  ;;  %v1439_v50 = vor.u32 %v1840_v44, %v1436_v45  ;;  %v1300_v52 = vld [vmem:[#allocation5 + $0x18] sm:$0xf0] }
  0x3e   :  { %585 = vmatpush.bf16.msrb.mxu2 %v1471_v2  ;;  %v1822_v53 = vld [vmem:[#allocation5 + $0x94] sm:$0xf]  ;;  %v1503_v54 = vor.u32 %v1856_v46, %v1500_v47  ;;  %v1364_v56 = vld [vmem:[#allocation5 + $0x98] sm:$0xf0]  ;;  %v1303_v63 = vor.u32 %v1806_v51, %v1300_v52  ;;  %v1804_v3 = vld [vmem:[#allocation5 + $0x4] sm:$0xf] }
  0x3f   :  { %599 = vmatpush.bf16.msrb.mxu3 %v1535_v6  ;;  %v1838_v57 = vld [vmem:[#allocation5 + $0x114] sm:$0xf]  ;;  %v1428_v58 = vld [vmem:[#allocation5 + $0x118] sm:$0xf0]  ;;  %v1367_v1 = vor.u32 %v1822_v53, %v1364_v56  ;;  %v1292_v4 = vld [vmem:[#allocation5 + $0x8] sm:$0xf0] }
  0x40   :  { %558 = vmatpush.bf16.msrb.mxu0 %v1335_v12  ;;  %v1854_v61 = vld [vmem:[#allocation5 + $0x194] sm:$0xf]  ;;  %v1492_v62 = vld [vmem:[#allocation5 + $0x198] sm:$0xf0]  ;;  %v1431_v2 = vor.u32 %v1838_v57, %v1428_v58  ;;  %v1820_v5 = vld [vmem:[#allocation5 + $0x84] sm:$0xf]  ;;  %v1295_v12 = vor.u32 %v1804_v3, %v1292_v4 }
  0x41   :  { %572 = vmatpush.bf16.msrb.mxu1 %v1399_v13  ;;  %v1495_v6 = vor.u32 %v1854_v61, %v1492_v62  ;;  %v1356_v7 = vld [vmem:[#allocation5 + $0x88] sm:$0xf0]  ;;  %v1836_v8 = vld [vmem:[#allocation5 + $0x104] sm:$0xf]  ;;  %v1602_v16 = vld [vmem:[#allocation7 + $0x70] sm:$0xf] }
  0x42   :  { %586 = vmatpush.bf16.msrb.mxu2 %v1463_v14  ;;  %v1420_v9 = vld [vmem:[#allocation5 + $0x108] sm:$0xf0]  ;;  %v1852_v10 = vld [vmem:[#allocation5 + $0x184] sm:$0xf]  ;;  %v1359_v13 = vor.u32 %v1820_v5, %v1356_v7  ;;  %v1883_v17 = vld [vmem:[#allocation7 + $0x74] sm:$0xf0] }
  0x43   :  { %600 = vmatpush.bf16.msrb.mxu3 %v1527_v18  ;;  %v1484_v11 = vld [vmem:[#allocation5 + $0x188] sm:$0xf0]  ;;  %v1423_v14 = vor.u32 %v1836_v8, %v1420_v9  ;;  %v1882_v18 = vld [vmem:[#allocation7 + $0x74] sm:$0xf]  ;;  %v1603_v19 = vor.u32 %v1883_v17, %v1602_v16  ;;  %v1604_v20 = vld [vmem:[#allocation7 + $0x78] sm:$0xf0] }
  0x44   :  { %559 = vmatpush.bf16.msrb.mxu0 %v1327_v24  ;;  %v1487_v15 = vor.u32 %v1852_v10, %v1484_v11  ;;  %v1607_v21 = vor.u32 %v1882_v18, %v1604_v20  ;;  %v1594_v22 = vld [vmem:[#allocation7 + $0x60] sm:$0xf]  ;;  %v1881_v23 = vld [vmem:[#allocation7 + $0x64] sm:$0xf0]  ;;  %v1880_v24 = vld [vmem:[#allocation7 + $0x64] sm:$0xf] }
  0x45   :  { %573 = vmatpush.bf16.msrb.mxu1 %v1391_v25  ;;  %v1595_v25 = vor.u32 %v1881_v23, %v1594_v22  ;;  %v1878_v27 = vld [vmem:[#allocation7 + $0x54] sm:$0xf]  ;;  %v1588_v28 = vld [vmem:[#allocation7 + $0x58] sm:$0xf0]  ;;  %v1877_v31 = vld [vmem:[#allocation7 + $0x44] sm:$0xf0] }
  0x46   :  { %587 = vmatpush.bf16.msrb.mxu2 %v1455_v26  ;;  %v1596_v26 = vld [vmem:[#allocation7 + $0x68] sm:$0xf0]  ;;  %v1591_v29 = vor.u32 %v1878_v27, %v1588_v28  ;;  %v1876_v32 = vld [vmem:[#allocation7 + $0x44] sm:$0xf]  ;;  %v1572_v40 = vld [vmem:[#allocation7 + $0x38] sm:$0xf0] }
  0x47   :  { %601 = vmatpush.bf16.msrb.mxu3 %v1519_v30  ;;  %v1578_v30 = vld [vmem:[#allocation7 + $0x40] sm:$0xf]  ;;  %v1580_v34 = vld [vmem:[#allocation7 + $0x48] sm:$0xf0]  ;;  %v1873_v44 = vld [vmem:[#allocation7 + $0x24] sm:$0xf0] }
  0x48   :  { %560 = vmatpush.bf16.msrb.mxu0 %v1319_v36  ;;  %v1579_v33 = vor.u32 %v1877_v31, %v1578_v30  ;;  %v1583_v35 = vor.u32 %v1876_v32, %v1580_v34  ;;  %v1570_v36 = vld [vmem:[#allocation7 + $0x30] sm:$0xf]  ;;  %v1562_v43 = vld [vmem:[#allocation7 + $0x20] sm:$0xf]  ;;  %v1872_v45 = vld [vmem:[#allocation7 + $0x24] sm:$0xf] }
  0x49   :  { %574 = vmatpush.bf16.msrb.mxu1 %v1383_v37  ;;  %v1875_v37 = vld [vmem:[#allocation7 + $0x34] sm:$0xf0]  ;;  %v1563_v46 = vor.u32 %v1873_v44, %v1562_v43  ;;  %v1564_v47 = vld [vmem:[#allocation7 + $0x28] sm:$0xf0]  ;;  %v1870_v52 = vld [vmem:[#allocation7 + $0x14] sm:$0xf] }
  0x4a   :  { %588 = vmatpush.bf16.msrb.mxu2 %v1447_v38  ;;  %v1874_v38 = vld [vmem:[#allocation7 + $0x34] sm:$0xf]  ;;  %v1571_v39 = vor.u32 %v1875_v37, %v1570_v36  ;;  %v1871_v51 = vld [vmem:[#allocation7 + $0x14] sm:$0xf0]  ;;  %v1546_v58 = vld [vmem:[#allocation7] sm:$0xf] }
  0x4b   :  { %602 = vmatpush.bf16.msrb.mxu3 %v1511_v42  ;;  %v1575_v41 = vor.u32 %v1874_v38, %v1572_v40  ;;  %v2179_v42 = vld [vmem:[#allocation5 + $0x200] sm:$0x11]  ;;  %v1869_v61 = vld [vmem:[#allocation7 + $0x4] sm:$0xf0]  ;;  %v1868_v62 = vld [vmem:[#allocation7 + $0x4] sm:$0xf] }
  0x4c   :  { %561 = vmatpush.bf16.msrb.mxu0 %v1311_v48  ;;  %v1567_v48 = vor.u32 %v1872_v45, %v1564_v47  ;;  %v1899_v3 = vld [vmem:[#allocation7 + $0xf4] sm:$0xf0]  ;;  %v1668_v7 = vld [vmem:[#allocation7 + $0xf8] sm:$0xf0]  ;;  %v1660_v17 = vld [vmem:[#allocation7 + $0xe8] sm:$0xf0] }
  0x4d   :  { %575 = vmatpush.bf16.msrb.mxu1 %v1375_v49  ;;  %v156_v49 = vunpack.c.l.bf16 %v2179_v42  ;;  %v1650_v22 = vld [vmem:[#allocation7 + $0xd0] sm:$0xf]  ;;  %v1895_v23 = vld [vmem:[#allocation7 + $0xd4] sm:$0xf0]  ;;  %v1893_v30 = vld [vmem:[#allocation7 + $0xc4] sm:$0xf0] }
  0x4e   :  { %589 = vmatpush.bf16.msrb.mxu2 %v1439_v50  ;;  %v1554_v50 = vld [vmem:[#allocation7 + $0x10] sm:$0xf]  ;;  %v1644_v34 = vld [vmem:[#allocation7 + $0xc8] sm:$0xf0]  ;;  %v1891_v40 = vld [vmem:[#allocation7 + $0xb4] sm:$0xf0] }
  0x4f   :  { %603 = vmatpush.bf16.msrb.mxu3 %v1503_v54  ;;  %v1555_v53 = vor.u32 %v1871_v51, %v1554_v50  ;;  %v1556_v54 = vld [vmem:[#allocation7 + $0x18] sm:$0xf0]  ;;  %v158_v57 = vperm.slane %v156_v49, 0  ;;  %v1889_v49 = vld [vmem:[#allocation7 + $0xa4] sm:$0xf0]  ;;  %vm1248_vm0 = vcmask 130048  }
  0x50   :  { %562 = vmatpush.bf16.msrb.mxu0 %v1303_v63  ;;  %v1559_v56 = vor.u32 %v1870_v52, %v1556_v54  ;;  %v1547_v63 = vor.u32 %v1869_v61, %v1546_v58  ;;  %v1636_v44 = vld [vmem:[#allocation7 + $0xb8] sm:$0xf0]  ;;  %v1888_v51 = vld [vmem:[#allocation7 + $0xa4] sm:$0xf]  ;;  %v1628_v52 = vld [vmem:[#allocation7 + $0xa8] sm:$0xf0] }
  0x51   :  { %576 = vmatpush.bf16.msrb.mxu1 %v1367_v1  ;;  %v1548_v1 = vld [vmem:[#allocation7 + $0x8] sm:$0xf0]  ;;  %v1631_v54 = vor.u32 %v1888_v51, %v1628_v52  ;;  %v1887_v58 = vld [vmem:[#allocation7 + $0x94] sm:$0xf0]  ;;  %v1886_v61 = vld [vmem:[#allocation7 + $0x94] sm:$0xf] }
  0x52   :  { %590 = vmatpush.bf16.msrb.mxu2 %v1431_v2  ;;  %v1666_v2 = vld [vmem:[#allocation7 + $0xf0] sm:$0xf]  ;;  %v1551_v4 = vor.u32 %v1868_v62, %v1548_v1  ;;  %v1620_v1 = vld [vmem:[#allocation7 + $0x98] sm:$0xf0]  ;;  %s2109_s28 = smov [#allocation10]   ;;  %s1257_s1 = sshll.u32 %s2249_s6, 4  ;;  %s1258_s1 = int_to_ptr.hbm [resolvable:$true] %s1257_s1 }
  0x53   :  { %604 = vmatpush.bf16.msrb.mxu3 %v1495_v6  ;;  %v1667_v5 = vor.u32 %v1899_v3, %v1666_v2  ;;  %v1898_v6 = vld [vmem:[#allocation7 + $0xf4] sm:$0xf]  ;;  %v1623_v2 = vor.u32 %v1886_v61, %v1620_v1  ;;  %s1255_s7 = sshll.u32 %s2109_s28, 4  ;;  %s1256_s7 = int_to_ptr.vmem [resolvable:$true] %s1255_s7 }
  0x54   :  { %563 = vmatpush.bf16.msrb.mxu0 %v1295_v12  ;;  %v1671_v9 = vor.u32 %v1898_v6, %v1668_v7  ;;  %v1658_v12 = vld [vmem:[#allocation7 + $0xe0] sm:$0xf]  ;;  %v1885_v6 = vld [vmem:[#allocation7 + $0x84] sm:$0xf0]  ;;  %v1884_v7 = vld [vmem:[#allocation7 + $0x84] sm:$0xf] }
  0x55   :  { %577 = vmatpush.bf16.msrb.mxu1 %v1359_v13  ;;  %v1897_v13 = vld [vmem:[#allocation7 + $0xe4] sm:$0xf0]  ;;  %v1909_v52 = vld [vmem:[#allocation8 + $0x48] sm:$0xff] }
  0x56   :  { %591 = vmatpush.bf16.msrb.mxu2 %v1423_v14  ;;  %v1896_v14 = vld [vmem:[#allocation7 + $0xe4] sm:$0xf]  ;;  %v1659_v16 = vor.u32 %v1897_v13, %v1658_v12 }
  0x57   :  { %605 = vmatpush.bf16.msrb.mxu3 %v1487_v15  ;;  %564 = vmatmul.bf16.vlgmr.msrb.gmra.mxu0 %v2165_v59  ;;  %v1599_v59 = vor.u32 %v1880_v24, %v1596_v26  ;;  %v1663_v18 = vor.u32 %v1896_v14, %v1660_v17  ;;  %v1894_v24 = vld [vmem:[#allocation7 + $0xd4] sm:$0xf]  ;;  %v1652_v26 = vld [vmem:[#allocation7 + $0xd8] sm:$0xf0] }
  0x58   :  { %578 = vmatmul.bf16.vlgmr.msrb.gmra.mxu1 %v2169_v0  ;;  %827 = vmatpush.bf16.msra.mxu0 %v1603_v19  ;;  %v1586_v0 = vld [vmem:[#allocation7 + $0x50] sm:$0xf] }
  0x59   :  { %592 = vmatmul.bf16.vlgmr.msrb.gmra.mxu2 %v2163_v55  ;;  %v1879_v55 = vld [vmem:[#allocation7 + $0x54] sm:$0xf0]  ;;  %841 = vmatpush.bf16.msra.mxu1 %v1667_v5  ;;  %v1610_v5 = vld [vmem:[#allocation7 + $0x80] sm:$0xf] }
  0x5a   :  { %606 = vmatmul.bf16.vlgmr.msrb.gmra.mxu3 %v2167_v60  ;;  %855 = vmatpush.bf16.msra.mxu2 %v1607_v21  ;;  %v1587_v60 = vor.u32 %v1879_v55, %v1586_v0  ;;  %v1655_v55 = vor.u32 %v1894_v24, %v1652_v26 }
  0x5b   :  { %869 = vmatpush.bf16.msra.mxu3 %v1671_v9 }
  0x5c   :  { %828 = vmatpush.bf16.msra.mxu0 %v1595_v25  ;;  %v1651_v25 = vor.u32 %v1895_v23, %v1650_v22 }
  0x5d   :  { %842 = vmatpush.bf16.msra.mxu1 %v1659_v16 }
  0x5e   :  { %856 = vmatpush.bf16.msra.mxu2 %v1599_v59 }
  0x5f   :  { %870 = vmatpush.bf16.msra.mxu3 %v1663_v18 }
  0x60   :  { %829 = vmatpush.bf16.msra.mxu0 %v1587_v60 }
  0x61   :  { %843 = vmatpush.bf16.msra.mxu1 %v1651_v25 }
  0x62   :  { %857 = vmatpush.bf16.msra.mxu2 %v1591_v29  ;;  %v1642_v29 = vld [vmem:[#allocation7 + $0xc0] sm:$0xf] }
  0x63   :  { %871 = vmatpush.bf16.msra.mxu3 %v1655_v55  ;;  %v1643_v32 = vor.u32 %v1893_v30, %v1642_v29 }
  0x64   :  { %830 = vmatpush.bf16.msra.mxu0 %v1579_v33  ;;  %v1892_v33 = vld [vmem:[#allocation7 + $0xc4] sm:$0xf] }
  0x65   :  { %844 = vmatpush.bf16.msra.mxu1 %v1643_v32 }
  0x66   :  { %858 = vmatpush.bf16.msra.mxu2 %v1583_v35  ;;  %v1647_v35 = vor.u32 %v1892_v33, %v1644_v34 }
  0x68   :  { %831 = vmatpush.bf16.msra.mxu0 %v1571_v39  ;;  %872 = vmatpush.bf16.msra.mxu3 %v1647_v35  ;;  %v1634_v39 = vld [vmem:[#allocation7 + $0xb0] sm:$0xf]  ;;  %v1907_v35 = vld [vmem:[#allocation8 + $0x38] sm:$0xff] }
  0x69   :  { %v1635_v43 = vor.u32 %v1891_v40, %v1634_v39  ;;  %v1914_v39 = vld [vmem:[#allocation8 + $0x70] sm:$0xff]  ;;  %v1904_v40 = vld [vmem:[#allocation8 + $0x20] sm:$0xff] }
  0x6a   :  { %859 = vmatpush.bf16.msra.mxu2 %v1575_v41  ;;  %v1890_v41 = vld [vmem:[#allocation7 + $0xb4] sm:$0xf] }
  0x6b   :  { %845 = vmatpush.bf16.msra.mxu1 %v1635_v43  ;;  %v1903_v43 = vld [vmem:[#allocation8 + $0x18] sm:$0xff] }
  0x6c   :  { %832 = vmatpush.bf16.msra.mxu0 %v1563_v46  ;;  %v1639_v46 = vor.u32 %v1890_v41, %v1636_v44  ;;  %v1913_v41 = vld [vmem:[#allocation8 + $0x68] sm:$0xff]  ;;  %v1912_v44 = vld [vmem:[#allocation8 + $0x60] sm:$0xff] }
  0x6e   :  { %860 = vmatpush.bf16.msra.mxu2 %v1567_v48  ;;  %873 = vmatpush.bf16.msra.mxu3 %v1639_v46  ;;  %v1626_v48 = vld [vmem:[#allocation7 + $0xa0] sm:$0xf] }
  0x6f   :  { %v1627_v50 = vor.u32 %v1889_v49, %v1626_v48  ;;  %v1911_v46 = vld [vmem:[#allocation8 + $0x58] sm:$0xff]  ;;  %v1910_v49 = vld [vmem:[#allocation8 + $0x50] sm:$0xff] }
  0x70   :  { %833 = vmatpush.bf16.msra.mxu0 %v1555_v53  ;;  %v662_v48 = vld [vmem:[#allocation7 + $0x100] sm:$0x11] }
  0x71   :  { %846 = vmatpush.bf16.msra.mxu1 %v1627_v50  ;;  %v1900_v50 = vld [vmem:[#allocation8] sm:$0xff]  ;;  %v663_v51 = vunpack.c.l.bf16 %v662_v48 }
  0x72   :  { %861 = vmatpush.bf16.msra.mxu2 %v1559_v56  ;;  %v157_v56 = vunpack.c.h.bf16 %v2179_v42  ;;  %874 = vmatpush.bf16.msra.mxu3 %v1631_v54  ;;  %v1612_v42 = vld [vmem:[#allocation7 + $0x88] sm:$0xf0] }
  0x73   :  { %v1615_v12 = vor.u32 %v1884_v7, %v1612_v42  ;;  %v665_v54 = vperm.slane %v663_v51, 0 }
  0x74   :  { %834 = vmatpush.bf16.msra.mxu0 %v1547_v63  ;;  %v159_v3 = vperm.slane %v157_v56, 0  ;;  %v1908_v56 = vld [vmem:[#allocation8 + $0x40] sm:$0xff] }
  0x76   :  { %862 = vmatpush.bf16.msra.mxu2 %v1551_v4  ;;  %875 = vmatpush.bf16.msra.mxu3 %v1623_v2 }
  0x78   :  { %1032 = vmatpush.bf16.msrb.mxu0 %v1907_v35 }
  0x7a   :  { %876 = vmatpush.bf16.msra.mxu3 %v1615_v12 }
  0xb4   :  { %v509_v8 = vpop.f32.mrf.mxu0 }
  0xb5   :  { %v510_v10 = vadd.f32 %v509_v8, %v158_v57  ;;  %v523_v11 = vpop.f32.mrf.mxu1 }
  0xb7   :  { %v524_v15 = vadd.f32 %v523_v11, %v510_v10  ;;  %v1611_v10 = vor.u32 %v1885_v6, %v1610_v5 }
  0xbc   :  { %v537_v19 = vpop.f32.mrf.mxu2  ;;  %v511_v0 = vpop.f32.mrf.mxu0 }
  0xbd   :  { %v538_v20 = vadd.f32 %v537_v19, %v524_v15  ;;  %v551_v21 = vpop.f32.mrf.mxu3  ;;  %v512_v27 = vadd.f32 %v511_v0, %v158_v57  ;;  %v525_v60 = vpop.f32.mrf.mxu1  ;;  %v1618_v57 = vld [vmem:[#allocation7 + $0x90] sm:$0xf] }
  0xbe   :  { %v1619_v63 = vor.u32 %v1887_v58, %v1618_v57  ;;  %v664_v57 = vunpack.c.h.bf16 %v662_v48 }
  0xbf   :  { %v552_v59 = vadd.f32 %v551_v21, %v538_v20  ;;  %v526_v31 = vadd.f32 %v525_v60, %v512_v27 }
  0xc0   :  { %847 = vmatpush.bf16.msra.mxu1 %v1619_v63  ;;  %v666_v63 = vperm.slane %v664_v57, 0 }
  0xc1   :  { %v612_v28 = vmul.f32 0.5, %v552_v59 }
  0xc3   :  { %1943 = vtanh.f32 %v612_v28 }
  0xc4   :  { %v539_v36 = vpop.f32.mrf.mxu2  ;;  %848 = vmatpush.bf16.msra.mxu1 %v1611_v10 }
  0xc5   :  { %v540_v37 = vadd.f32 %v539_v36, %v526_v31  ;;  %v553_v38 = vpop.f32.mrf.mxu3  ;;  %v1906_v36 = vld [vmem:[#allocation8 + $0x30] sm:$0xff] }
  0xc6   :  { %1033 = vmatpush.bf16.msrb.mxu0 %v1906_v36 }
  0xc7   :  { %v554_v45 = vadd.f32 %v553_v38, %v540_v37  ;;  %v1915_v37 = vld [vmem:[#allocation8 + $0x78] sm:$0xff]  ;;  %v1905_v38 = vld [vmem:[#allocation8 + $0x28] sm:$0xff] }
  0xc8   :  { %1046 = vmatpush.bf16.msrb.mxu1 %v1915_v37  ;;  %v1931_v37 = vld [vmem:[%s2248_s5 + $0x38] sm:$0xff] }
  0xc9   :  { %v614_v47 = vmul.f32 0.5, %v554_v45  ;;  %v1944_v53 = vpop.eup %1943  ;;  %v1902_v45 = vld [vmem:[#allocation8 + $0x10] sm:$0xff]  ;;  %1226 = vmatpush.bf16.msrb.mxu3 %v1931_v37 }
  0xca   :  { %v620_v62 = vadd.f32 1.0, %v1944_v53  ;;  %1034 = vmatpush.bf16.msrb.mxu0 %v1905_v38 }
  0xcb   :  { %1945 = vtanh.f32 %v614_v47  ;;  %v1901_v47 = vld [vmem:[#allocation8 + $0x8] sm:$0xff] }
  0xcc   :  { %v624_v8 = vmul.f32 0.5, %v620_v62  ;;  %1047 = vmatpush.bf16.msrb.mxu1 %v1914_v39  ;;  %v1930_v39 = vld [vmem:[%s2248_s5 + $0x30] sm:$0xff] }
  0xcd   :  { %1227 = vmatpush.bf16.msrb.mxu3 %v1930_v39 }
  0xce   :  { %1035 = vmatpush.bf16.msrb.mxu0 %v1904_v40 }
  0xd0   :  { %1048 = vmatpush.bf16.msrb.mxu1 %v1913_v41 }
  0xd1   :  { %v1946_v4 = vpop.eup %1945 }
  0xd2   :  { %v622_v9 = vadd.f32 1.0, %v1946_v4  ;;  %1036 = vmatpush.bf16.msrb.mxu0 %v1903_v43 }
  0xd4   :  { %v565_v11 = vpop.f32.mrf.mxu0  ;;  %v626_v13 = vmul.f32 0.5, %v622_v9  ;;  %1049 = vmatpush.bf16.msrb.mxu1 %v1912_v44 }
  0xd5   :  { %v566_v14 = vadd.f32 %v565_v11, %v159_v3  ;;  %v579_v16 = vpop.f32.mrf.mxu1 }
  0xd6   :  { %v628_v15 = vpack.c.bf16 %v626_v13, %v624_v8  ;;  %1037 = vmatpush.bf16.msrb.mxu0 %v1902_v45 }
  0xd7   :  { %v580_v17 = vadd.f32 %v579_v16, %v566_v14 }
  0xd8   :  { %835 = vmatmul.bf16.vlgmr.msra.gmra.mxu0 %v628_v15  ;;  %863 = vmatmul.bf16.vlgmr.msra.gmra.mxu2 %v628_v15 }
  0xd9   :  { %1050 = vmatpush.bf16.msrb.mxu1 %v1911_v46 }
  0xda   :  { %1038 = vmatpush.bf16.msrb.mxu0 %v1901_v47 }
  0xdc   :  { %v593_v18 = vpop.f32.mrf.mxu2  ;;  %v567_v21 = vpop.f32.mrf.mxu0 }
  0xdd   :  { %v594_v19 = vadd.f32 %v593_v18, %v580_v17  ;;  %v607_v20 = vpop.f32.mrf.mxu3  ;;  %v568_v23 = vadd.f32 %v567_v21, %v159_v3  ;;  %v581_v24 = vpop.f32.mrf.mxu1  ;;  %1051 = vmatpush.bf16.msrb.mxu1 %v1910_v49 }
  0xde   :  { %1039 = vmatpush.bf16.msrb.mxu0 %v1900_v50 }
  0xdf   :  { %v608_v22 = vadd.f32 %v607_v20, %v594_v19  ;;  %v582_v26 = vadd.f32 %v581_v24, %v568_v23 }
  0xe1   :  { %v613_v25 = vmul.f32 0.5, %v608_v22  ;;  %1052 = vmatpush.bf16.msrb.mxu1 %v1909_v52 }
  0xe3   :  { %1947 = vtanh.f32 %v613_v25 }
  0xe4   :  { %v595_v59 = vpop.f32.mrf.mxu2 }
  0xe5   :  { %v596_v0 = vadd.f32 %v595_v59, %v582_v26  ;;  %v609_v55 = vpop.f32.mrf.mxu3  ;;  %1053 = vmatpush.bf16.msrb.mxu1 %v1908_v56 }
  0xe7   :  { %v610_v27 = vadd.f32 %v609_v55, %v596_v0 }
  0xe9   :  { %v615_v60 = vmul.f32 0.5, %v610_v27  ;;  %v1948_v28 = vpop.eup %1947  ;;  %v1923_v27 = vld [vmem:[%s2247_s4 + $0x38] sm:$0xff] }
  0xea   :  { %v621_v29 = vadd.f32 1.0, %v1948_v28  ;;  %1136 = vmatpush.bf16.msrb.mxu2 %v1923_v27  ;;  %v1921_v28 = vld [vmem:[%s2247_s4 + $0x28] sm:$0xff] }
  0xeb   :  { %1949 = vtanh.f32 %v615_v60  ;;  %v1922_v60 = vld [vmem:[%s2247_s4 + $0x30] sm:$0xff] }
  0xec   :  { %v625_v32 = vmul.f32 0.5, %v621_v29  ;;  %v1920_v29 = vld [vmem:[%s2247_s4 + $0x20] sm:$0xff] }
  0xee   :  { %1137 = vmatpush.bf16.msrb.mxu2 %v1922_v60 }
  0xf1   :  { %v1950_v30 = vpop.eup %1949 }
  0xf2   :  { %v623_v31 = vadd.f32 1.0, %v1950_v30  ;;  %1138 = vmatpush.bf16.msrb.mxu2 %v1921_v28  ;;  %v1919_v30 = vld [vmem:[%s2247_s4 + $0x18] sm:$0xff] }
  0xf4   :  { %v627_v33 = vmul.f32 0.5, %v623_v31  ;;  %v1918_v31 = vld [vmem:[%s2247_s4 + $0x10] sm:$0xff] }
  0xf6   :  { %v629_v34 = vpack.c.bf16 %v627_v33, %v625_v32  ;;  %1139 = vmatpush.bf16.msrb.mxu2 %v1920_v29  ;;  %v1917_v32 = vld [vmem:[%s2247_s4 + $0x8] sm:$0xff]  ;;  %v933_v33 = vld [vmem:[#allocation8 + $0x80] sm:$0x1] }
  0xf7   :  { %v934_v35 = vunpack.c.l.bf16 %v933_v33 }
  0xf8   :  { %849 = vmatmul.bf16.vlgmr.msra.gmra.mxu1 %v629_v34  ;;  %877 = vmatmul.bf16.vlgmr.msra.gmra.mxu3 %v629_v34  ;;  %v1916_v34 = vld [vmem:[%s2247_s4] sm:$0xff] }
  0xf9   :  { %v935_v38 = vperm.slane %v934_v35, 0 }
  0xfa   :  { %1140 = vmatpush.bf16.msrb.mxu2 %v1919_v30 }
  0xfe   :  { %1141 = vmatpush.bf16.msrb.mxu2 %v1918_v31 }
 0x102   :  { %1142 = vmatpush.bf16.msrb.mxu2 %v1917_v32 }
 0x106   :  { %1143 = vmatpush.bf16.msrb.mxu2 %v1916_v34 }
 0x155   :  { %v836_v53 = vpop.f32.mrf.mxu0 }
 0x156   :  { %v837_v58 = vadd.f32 %v836_v53, %v665_v54 }
 0x15b   :  { %v864_v61 = vpop.f32.mrf.mxu2 }
 0x15c   :  { %v865_v3 = vadd.f32 %v864_v61, %v666_v63  ;;  %v1928_v61 = vld [vmem:[%s2248_s5 + $0x20] sm:$0xff] }
 0x15d   :  { %v838_v2 = vpop.f32.mrf.mxu0 }
 0x15e   :  { %v839_v6 = vadd.f32 %v838_v2, %v665_v54  ;;  %v1085_v2 = vld [vmem:[%s2247_s4 + $0x40] sm:$0x1] }
 0x163   :  { %v866_v10 = vpop.f32.mrf.mxu2 }
 0x164   :  { %v867_v12 = vadd.f32 %v866_v10, %v666_v63  ;;  %v1926_v63 = vld [vmem:[%s2248_s5 + $0x10] sm:$0xff] }
 0x175   :  { %v850_v62 = vpop.f32.mrf.mxu1 }
 0x176   :  { %v851_v1 = vadd.f32 %v850_v62, %v837_v58  ;;  %v1929_v58 = vld [vmem:[%s2248_s5 + $0x28] sm:$0xff]  ;;  %v1927_v62 = vld [vmem:[%s2248_s5 + $0x18] sm:$0xff] }
 0x177   :  { %1228 = vmatpush.bf16.msrb.mxu3 %v1929_v58 }
 0x178   :  { %v883_v4 = vmul.f32 0.5, %v851_v1  ;;  %v1925_v1 = vld [vmem:[%s2248_s5 + $0x8] sm:$0xff] }
 0x17a   :  { %1951 = vtanh.f32 %v883_v4  ;;  %v1086_v4 = vunpack.c.l.bf16 %v1085_v2 }
 0x17b   :  { %v878_v5 = vpop.f32.mrf.mxu3  ;;  %1229 = vmatpush.bf16.msrb.mxu3 %v1928_v61 }
 0x17c   :  { %v879_v7 = vadd.f32 %v878_v5, %v865_v3  ;;  %v1924_v3 = vld [vmem:[%s2248_s5] sm:$0xff]  ;;  %v1087_v5 = vperm.slane %v1086_v4, 0 }
 0x17d   :  { %v852_v8 = vpop.f32.mrf.mxu1 }
 0x17e   :  { %v853_v9 = vadd.f32 %v852_v8, %v839_v6  ;;  %v884_v42 = vmul.f32 0.5, %v879_v7 }
 0x17f   :  { %1230 = vmatpush.bf16.msrb.mxu3 %v1927_v62 }
 0x180   :  { %v885_v11 = vmul.f32 0.5, %v853_v9  ;;  %v1952_v14 = vpop.eup %1951 }
 0x181   :  { %v891_v17 = vadd.f32 1.0, %v1952_v14 }
 0x182   :  { %1953 = vtanh.f32 %v885_v11 }
 0x183   :  { %v880_v13 = vpop.f32.mrf.mxu3  ;;  %1955 = vtanh.f32 %v884_v42  ;;  %v895_v21 = vmul.f32 0.5, %v891_v17  ;;  %1231 = vmatpush.bf16.msrb.mxu3 %v1926_v63 }
 0x184   :  { %v881_v15 = vadd.f32 %v880_v13, %v867_v12 }
 0x186   :  { %v886_v16 = vmul.f32 0.5, %v881_v15 }
 0x187   :  { %1232 = vmatpush.bf16.msrb.mxu3 %v1925_v1 }
 0x188   :  { %v1954_v18 = vpop.eup %1953  ;;  %1957 = vtanh.f32 %v886_v16 }
 0x189   :  { %v893_v19 = vadd.f32 1.0, %v1954_v18  ;;  %v1956_v20 = vpop.eup %1955  ;;  %v1175_v18 = vld [vmem:[%s2248_s5 + $0x40] sm:$0x1] }
 0x18a   :  { %v892_v23 = vadd.f32 1.0, %v1956_v20 }
 0x18b   :  { %v897_v22 = vmul.f32 0.5, %v893_v19  ;;  %1233 = vmatpush.bf16.msrb.mxu3 %v1924_v3  ;;  %v1176_v19 = vunpack.c.l.bf16 %v1175_v18 }
 0x18c   :  { %v896_v59 = vmul.f32 0.5, %v892_v23 }
 0x18d   :  { %v899_v24 = vpack.c.bf16 %v897_v22, %v895_v21  ;;  %v1177_v20 = vperm.slane %v1176_v19, 0 }
 0x18e   :  { %v1958_v25 = vpop.eup %1957 }
 0x18f   :  { %v894_v26 = vadd.f32 1.0, %v1958_v25  ;;  %1040 = vmatmul.bf16.vlgmr.msrb.gmra.mxu0 %v899_v24 }
 0x191   :  { %v898_v0 = vmul.f32 0.5, %v894_v26 }
 0x193   :  { %v900_v55 = vpack.c.bf16 %v898_v0, %v896_v59 }
 0x195   :  { %1054 = vmatmul.bf16.vlgmr.msrb.gmra.mxu1 %v900_v55 }
 0x20c   :  { %v1041_v36 = vpop.f32.mrf.mxu0 }
 0x20d   :  { %v1042_v40 = vadd.f32 %v1041_v36, %v935_v38 }
 0x212   :  { %v1055_v41 = vpop.f32.mrf.mxu1 }
 0x213   :  { %v1056_v43 = vadd.f32 %v1055_v41, %v1042_v40 }
 0x214   :  { %v1043_v44 = vpop.f32.mrf.mxu0 }
 0x215   :  { %v1060_v45 = vmul.f32 0.5, %v1056_v43  ;;  %v1044_v46 = vadd.f32 %v1043_v44, %v935_v38 }
 0x217   :  { %1959 = vtanh.f32 %v1060_v45 }
 0x21a   :  { %v1057_v47 = vpop.f32.mrf.mxu1 }
 0x21b   :  { %v1058_v48 = vadd.f32 %v1057_v47, %v1044_v46 }
 0x21d   :  { %v1061_v49 = vmul.f32 0.5, %v1058_v48  ;;  %v1960_v50 = vpop.eup %1959 }
 0x21e   :  { %v1064_v51 = vadd.f32 1.0, %v1960_v50 }
 0x21f   :  { %1961 = vtanh.f32 %v1061_v49 }
 0x220   :  { %v1066_v54 = vmul.f32 0.5, %v1064_v51 }
 0x225   :  { %v1962_v52 = vpop.eup %1961 }
 0x226   :  { %v1065_v53 = vadd.f32 1.0, %v1962_v52 }
 0x228   :  { %v1067_v56 = vmul.f32 0.5, %v1065_v53 }
 0x22a   :  { %v1068_v57 = vpack.c.bf16 %v1067_v56, %v1066_v54 }
 0x22c   :  { %1144 = vmatmul.bf16.vlgmr.msrb.gmra.mxu2 %v1068_v57 }
 0x2af   :  { %v1145_v6 = vpop.f32.mrf.mxu2 }
 0x2b0   :  { %v1146_v7 = vadd.f32 %v1145_v6, %v1087_v5 }
 0x2b2   :  { %v1150_v8 = vmul.f32 0.5, %v1146_v7 }
 0x2b4   :  { %1963 = vtanh.f32 %v1150_v8 }
 0x2b7   :  { %v1147_v9 = vpop.f32.mrf.mxu2 }
 0x2b8   :  { %v1148_v10 = vadd.f32 %v1147_v9, %v1087_v5 }
 0x2ba   :  { %v1151_v42 = vmul.f32 0.5, %v1148_v10  ;;  %v1964_v11 = vpop.eup %1963 }
 0x2bb   :  { %v1154_v12 = vadd.f32 1.0, %v1964_v11 }
 0x2bc   :  { %1965 = vtanh.f32 %v1151_v42 }
 0x2bd   :  { %v1156_v15 = vmul.f32 0.5, %v1154_v12 }
 0x2c2   :  { %v1966_v13 = vpop.eup %1965 }
 0x2c3   :  { %v1155_v14 = vadd.f32 1.0, %v1966_v13 }
 0x2c5   :  { %v1157_v16 = vmul.f32 0.5, %v1155_v14 }
 0x2c7   :  { %v1158_v17 = vpack.c.bf16 %v1157_v16, %v1156_v15 }
 0x2c9   :  { %1234 = vmatmul.bf16.vlgmr.msrb.gmra.mxu3 %v1158_v17 }
 0x34c   :  { %v1235_v21 = vpop.f32.mrf.mxu3 }
 0x34d   :  { %v1236_v22 = vadd.f32 %v1235_v21, %v1177_v20 }
 0x34f   :  { %v1240_v23 = vmul.f32 0.5, %v1236_v22 }
 0x351   :  { %1967 = vtanh.f32 %v1240_v23 }
 0x354   :  { %v1237_v24 = vpop.f32.mrf.mxu3 }
 0x355   :  { %v1238_v25 = vadd.f32 %v1237_v24, %v1177_v20 }
 0x357   :  { %v1968_v26 = vpop.eup %1967  ;;  %v1241_v59 = vmul.f32 0.5, %v1238_v25 }
 0x358   :  { %v1244_v0 = vadd.f32 1.0, %v1968_v26 }
 0x359   :  { %1969 = vtanh.f32 %v1241_v59 }
 0x35a   :  { %v1246_v55 = vmul.f32 0.5, %v1244_v0 }
 0x35c   :  { %1249 = vst.msk [vmem:[#allocation10] sm:$0xff] %vm1248_vm0, %v1246_v55 }
 0x35f   :  { %v1970_v27 = vpop.eup %1969 }
 0x360   :  { %v1245_v60 = vadd.f32 1.0, %v1970_v27 }
 0x362   :  { %v1247_v28 = vmul.f32 0.5, %v1245_v60 }
 0x364   :  { %1250 = vst.msk [vmem:[#allocation10 + $0x8] sm:$0xff] %vm1248_vm0, %v1247_v28 }
 0x365   :  { %1263 = dma.vmem_to_hbm [thread:$0]  %s1256_s7, 256, %s1258_s1, [#allocation4], %s2100_s29, %s2100_s29, %s2101_s30  }
 0x366   :  { %2097 = dma.done.wait [#allocation4], 256  }
 0x367   :  { %2098 = vsyncadd [#allocation4], 4294967040 }
 0x368   :  { %1268 = vsyncpa [#allocation3], 1 }
 0x369   :  { %1269 = vsyncpa [#allocation6], 1 }
 0x36a   :  { %1270 = vsyncpa [#allocation9], 1 }
 0x36b   :  { %1271 = vsyncpa [#allocation4], 1 }

</bundles_post_ra>
